<compile_context>
chip_gen: v6e
topology: v6e:2x2x1
jax: 0.10.0
libtpu: 0.0.40
codegen_flags: <defaults>
</compile_context>

<pallas_src>
import jax
import jax.numpy as jnp
from jax.experimental import pallas as pl
from jax.experimental.pallas import tpu as pltpu


# ----------------------------------------------------------------------------
# Kernel
# ----------------------------------------------------------------------------
def generator_kernel(x_ref, w_iv_ref, b_iv_ref, w_outf_ref, b_out_ref, out_ref):
    # Folded front-end (input_layer + attention value row): v = x @ w_iv + b_iv
    v = jnp.dot(x_ref[...], w_iv_ref[...],
                preferred_element_type=jnp.float32) + b_iv_ref[...]       # (tm, D) f32

    # Folded output projection tile: o = v @ w_out_folded[:, tile] + b_out[tile]
    w = w_outf_ref[...]                                                   # (D, tn) f32/bf16
    o = jnp.dot(v.astype(w.dtype), w,
                preferred_element_type=jnp.float32) + b_out_ref[...]      # (tm, tn) f32

    # Epilogue in f32 (v5e has no bf16 VPU/EUP); cast only at the store.
    out_ref[...] = jnp.tanh(o).astype(out_ref.dtype)


# ----------------------------------------------------------------------------
# One-time parameter preparation (run at init / checkpoint load, NOT per step)
# ----------------------------------------------------------------------------
def prepare_generator_params(params, *, weight_dtype=jnp.bfloat16):
    """Fold weights once.  Call this outside the per-step forward and cache it."""
    D = params['w_in'].shape[0]
    out_dim = params['w_out'].shape[1]

    # input_layer and attention.value fold into one (D, D) linear.
    w_iv = (params['w_in'] @ params['wv']).astype(jnp.float32)
    b_iv = (params['b_in'] @ params['wv'] + params['bv']).astype(jnp.float32)

    # (D*D, out_dim) output weight folds to (D, out_dim): row index is q*D + d,
    # and the uniform attention sums over the sequence position q.
    w_out_folded = params['w_out'].reshape(D, D, out_dim).sum(axis=0)
    w_out_folded = w_out_folded.astype(weight_dtype)

    return {
        'w_iv': w_iv,                               # (D, D) f32
        'b_iv': b_iv,                               # (1, D) f32
        'w_out_folded': w_out_folded,               # (D, out_dim) weight_dtype
        'b_out': params['b_out'].astype(jnp.float32),  # (1, out_dim) f32
    }


# ----------------------------------------------------------------------------
# Forward wrapper
# ----------------------------------------------------------------------------
def _round_up(n, m):
    return ((n + m - 1) // m) * m


def generator_forward(x, prepared, *, tile_n=None, tile_m=None):
    B, D = x.shape
    out_dim = prepared['w_out_folded'].shape[1]
    weight_dtype = prepared['w_out_folded'].dtype

    # --- output tile: lane-dense, ~2-4 grid steps, cdiv grid (ragged ok) ---
    if tile_n is None:
        if out_dim <= 128:
            tile_n = out_dim
        else:
            tile_n = max(128, _round_up(pl.cdiv(out_dim, 4), 128))
            # keep at least 2 grid steps so v7x megacore sharding is real
            tile_n = min(tile_n, _round_up(pl.cdiv(out_dim, 2), 128))

    # --- batch tile: keep output blocks small at large B (multiple of 8) ---
    if tile_m is None:
        tile_m = B if B <= 256 else 256

    grid_m = pl.cdiv(B, tile_m)
    grid_n = pl.cdiv(out_dim, tile_n)
    grid = (grid_m, grid_n)

    # --- right-sized VMEM limit from the real block footprint ---
    wbytes = jnp.dtype(weight_dtype).itemsize
    blk_bytes = (tile_m * D * 4            # x tile
                 + D * D * 4 + D * 4       # folded front-end weights (grid-invariant)
                 + D * tile_n * wbytes     # folded w_out tile
                 + tile_n * 4              # b_out tile
                 + tile_m * tile_n * 4)    # output tile
    vmem_limit = int(min(max(2.5 * blk_bytes, 4 * 1024 * 1024), 64 * 1024 * 1024))

    return pl.pallas_call(
        generator_kernel,
        out_shape=jax.ShapeDtypeStruct((B, out_dim), jnp.float32),
        grid=grid,
        in_specs=[
            pl.BlockSpec((tile_m, D), lambda i, j: (i, 0)),      # x
            pl.BlockSpec((D, D),      lambda i, j: (0, 0)),      # w_iv
            pl.BlockSpec((1, D),      lambda i, j: (0, 0)),      # b_iv
            pl.BlockSpec((D, tile_n), lambda i, j: (0, j)),      # folded w_out tile
            pl.BlockSpec((1, tile_n), lambda i, j: (0, j)),      # b_out tile
        ],
        out_specs=pl.BlockSpec((tile_m, tile_n), lambda i, j: (i, j)),
        compiler_params=pltpu.CompilerParams(
            dimension_semantics=("parallel", "parallel"),
            vmem_limit_bytes=vmem_limit,
        ),
    )(x, prepared['w_iv'], prepared['b_iv'],
      prepared['w_out_folded'], prepared['b_out'])


# ----------------------------------------------------------------------------
# Pure-JAX reference mirroring the full PyTorch forward graph exactly
# (including Q/K projections and explicit softmax attention), to validate the
# algebraic collapse used by the kernel.
# ----------------------------------------------------------------------------
def generator_reference(x, p):
    B, D = x.shape
    h = x @ p['w_in'] + p['b_in'][0]
    X = jnp.broadcast_to(h[:, None, :], (B, D, D))
    Q = X @ p['wq'] + p['bq'][0]
    K = X @ p['wk'] + p['bk'][0]
    V = X @ p['wv'] + p['bv'][0]
    S = jnp.einsum('bqd,bkd->bqk', Q, K) / (D ** 0.5)
    A = jax.nn.softmax(S, axis=-1)
    Wv = jnp.einsum('bqk,bkd->bqd', A, V)
    flat = Wv.reshape(B, D * D)
    return jnp.tanh(flat @ p['w_out'] + p['b_out'][0])


def init_params(key, in_dim, out_dim):
    ks = jax.random.split(key, 10)
    s_in = 1.0 / (in_dim ** 0.5)
    s_out = 1.0 / ((in_dim * in_dim) ** 0.5)
    f32 = jnp.float32
    return {
        'w_in':  jax.random.normal(ks[0], (in_dim, in_dim), f32) * s_in,
        'b_in':  jax.random.normal(ks[1], (1, in_dim), f32) * s_in,
        'wq':    jax.random.normal(ks[2], (in_dim, in_dim), f32) * s_in,
        'bq':    jax.random.normal(ks[3], (1, in_dim), f32) * s_in,
        'wk':    jax.random.normal(ks[4], (in_dim, in_dim), f32) * s_in,
        'bk':    jax.random.normal(ks[5], (1, in_dim), f32) * s_in,
        'wv':    jax.random.normal(ks[6], (in_dim, in_dim), f32) * s_in,
        'bv':    jax.random.normal(ks[7], (1, in_dim), f32) * s_in,
        'w_out': jax.random.normal(ks[8], (in_dim * in_dim, out_dim), f32) * s_out,
        'b_out': jax.random.normal(ks[9], (1, out_dim), f32) * s_out,
    }


if __name__ == "__main__":
    B, IN_DIM, OUT_DIM = 2, 32, 256   # small shapes; Generator defaults are (70, 14400)

    key = jax.random.PRNGKey(0)
    k_x, k_p = jax.random.split(key)
    x = jax.random.normal(k_x, (B, IN_DIM), jnp.float32)
    params = init_params(k_p, IN_DIM, OUT_DIM)

    ref = jax.block_until_ready(generator_reference(x, params))

    # f32 folded weights: exact (up to re-association) vs. the full reference.
    prep_f32 = jax.tree_util.tree_map(jax.block_until_ready,
                                      prepare_generator_params(params, weight_dtype=jnp.float32))
    out_f32 = jax.block_until_ready(generator_forward(x, prep_f32))
    assert out_f32.shape == (B, OUT_DIM), out_f32.shape
    err_f32 = float(jnp.max(jnp.abs(out_f32 - ref)))
    assert jnp.allclose(out_f32, ref, rtol=1e-4, atol=1e-4), err_f32

    # bf16-streamed folded weight (default / production path): loose tolerance.
    prep_bf16 = jax.tree_util.tree_map(jax.block_until_ready,
                                       prepare_generator_params(params, weight_dtype=jnp.bfloat16))
    out_bf16 = jax.block_until_ready(generator_forward(x, prep_bf16))
    assert out_bf16.shape == (B, OUT_DIM), out_bf16.shape
    err_bf16 = float(jnp.max(jnp.abs(out_bf16 - ref)))
    assert jnp.allclose(out_bf16, ref, rtol=3e-2, atol=3e-2), err_bf16

    print("KERNEL_OK")
</pallas_src>

<mosaic_0001>
module attributes {stable_mosaic.version = 11 : i64} {
  func.func @generator_kernel(%arg0: i32, %arg1: i32, %arg2: memref<2x32xf32, #tpu.memory_space<vmem>>, %arg3: memref<32x32xf32, #tpu.memory_space<vmem>>, %arg4: memref<1x32xf32, #tpu.memory_space<vmem>>, %arg5: memref<32x128xf32, #tpu.memory_space<vmem>>, %arg6: memref<1x128xf32, #tpu.memory_space<vmem>>, %arg7: memref<2x128xf32, #tpu.memory_space<vmem>>) attributes {dimension_semantics = [#tpu.dimension_semantics<parallel>, #tpu.dimension_semantics<parallel>], iteration_bounds = array<i64: 1, 2>, scalar_prefetch = 0 : i64, scratch_operands = 0 : i64, tpu.core_type = #tpu.core_type<tc>, window_params = [{transform_indices = @transform_0, window_bounds = array<i64: 2, 32>}, {pipeline_mode = #tpu.pipeline_mode<synchronous>, transform_indices = @transform_1, window_bounds = array<i64: 32, 32>}, {pipeline_mode = #tpu.pipeline_mode<synchronous>, transform_indices = @transform_2, window_bounds = array<i64: 1, 32>}, {transform_indices = @transform_3, window_bounds = array<i64: 32, 128>}, {transform_indices = @transform_4, window_bounds = array<i64: 1, 128>}, {transform_indices = @transform_5, window_bounds = array<i64: 2, 128>}]} {
    %c0 = arith.constant 0 : index
    %c0_0 = arith.constant 0 : index
    %0 = vector.load %arg2[%c0, %c0_0] : memref<2x32xf32, #tpu.memory_space<vmem>>, vector<2x32xf32>
    %c0_1 = arith.constant 0 : index
    %c0_2 = arith.constant 0 : index
    %1 = vector.load %arg3[%c0_1, %c0_2] : memref<32x32xf32, #tpu.memory_space<vmem>>, vector<32x32xf32>
    %cst = arith.constant dense<0.000000e+00> : vector<2x32xf32>
    %2 = tpu.matmul %0, %1, %cst {dimension_numbers = #tpu.dot_dimension_numbers<[1], [0], [0], [1], [0, 0, 1, 1], [], []>} : vector<2x32xf32>, vector<32x32xf32>, vector<2x32xf32> -> vector<2x32xf32>
    %c0_3 = arith.constant 0 : index
    %c0_4 = arith.constant 0 : index
    %3 = vector.load %arg4[%c0_3, %c0_4] : memref<1x32xf32, #tpu.memory_space<vmem>>, vector<1x32xf32>
    %4 = vector.broadcast %3 : vector<1x32xf32> to vector<2x32xf32>
    %5 = arith.addf %2, %4 : vector<2x32xf32>
    %c0_5 = arith.constant 0 : index
    %c0_6 = arith.constant 0 : index
    %6 = vector.load %arg5[%c0_5, %c0_6] : memref<32x128xf32, #tpu.memory_space<vmem>>, vector<32x128xf32>
    %cst_7 = arith.constant dense<0.000000e+00> : vector<2x128xf32>
    %7 = tpu.matmul %5, %6, %cst_7 {dimension_numbers = #tpu.dot_dimension_numbers<[1], [0], [0], [1], [0, 0, 1, 1], [], []>} : vector<2x32xf32>, vector<32x128xf32>, vector<2x128xf32> -> vector<2x128xf32>
    %c0_8 = arith.constant 0 : index
    %c0_9 = arith.constant 0 : index
    %8 = vector.load %arg6[%c0_8, %c0_9] : memref<1x128xf32, #tpu.memory_space<vmem>>, vector<1x128xf32>
    %9 = vector.broadcast %8 : vector<1x128xf32> to vector<2x128xf32>
    %10 = arith.addf %7, %9 : vector<2x128xf32>
    %11 = math.tanh %10 : vector<2x128xf32>
    %c0_10 = arith.constant 0 : index
    %c0_11 = arith.constant 0 : index
    %12 = vector.load %arg7[%c0_10, %c0_11] : memref<2x128xf32, #tpu.memory_space<vmem>>, vector<2x128xf32>
    tpu.vector_store %arg7[%c0_10, %c0_11], %11 {strides = array<i32>} : memref<2x128xf32, #tpu.memory_space<vmem>>, vector<2x128xf32>,
    return
  }
  func.func @transform_0(%arg0: i32, %arg1: i32) -> (i32, i32) {
    %c0_i32 = arith.constant 0 : i32
    %c0_i32_0 = arith.constant 0 : i32
    return %arg0, %c0_i32 : i32, i32
  }
  func.func @transform_1(%arg0: i32, %arg1: i32) -> (i32, i32) {
    %c0_i32 = arith.constant 0 : i32
    %c0_i32_0 = arith.constant 0 : i32
    %c0_i32_1 = arith.constant 0 : i32
    return %c0_i32, %c0_i32_0 : i32, i32
  }
  func.func @transform_2(%arg0: i32, %arg1: i32) -> (i32, i32) {
    %c0_i32 = arith.constant 0 : i32
    %c0_i32_0 = arith.constant 0 : i32
    %c0_i32_1 = arith.constant 0 : i32
    return %c0_i32, %c0_i32_0 : i32, i32
  }
  func.func @transform_3(%arg0: i32, %arg1: i32) -> (i32, i32) {
    %c0_i32 = arith.constant 0 : i32
    %c0_i32_0 = arith.constant 0 : i32
    return %c0_i32, %arg1 : i32, i32
  }
  func.func @transform_4(%arg0: i32, %arg1: i32) -> (i32, i32) {
    %c0_i32 = arith.constant 0 : i32
    %c0_i32_0 = arith.constant 0 : i32
    return %c0_i32, %arg1 : i32, i32
  }
  func.func @transform_5(%arg0: i32, %arg1: i32) -> (i32, i32) {
    %c0_i32 = arith.constant 0 : i32
    return %arg0, %arg1 : i32, i32
  }
}

</mosaic_0001>

<bundles_post_ra>
// kernel: tpu_custom_call.1
= control target key start
LH: loop header
LB: loop body
LE: loop exit
PB: predicated region body
PF: predicated region fallthrough
CT: control target
= control target key end

     0   :  { %s1163_s0 = inlined_call_operand.hbm [shape: f32[2,32], index: 0, kind: input, shape index: {}]   ;;  %s1164_s1 = inlined_call_operand.hbm [shape: f32[32,32], index: 1, kind: input, shape index: {}]   ;;  %s1165_s2 = inlined_call_operand.vmem [shape: f32[1,32], index: 2, kind: input, shape index: {}]   ;;  %s1166_s3 = inlined_call_operand.hbm [shape: f32[32,256], index: 3, kind: input, shape index: {}]   ;;  %s1167_s4 = inlined_call_operand.vmem [shape: f32[1,256], index: 4, kind: input, shape index: {}]   ;;  %s1168_s5 = inlined_call_operand.hbm [shape: f32[2,256], index: 5, kind: output, shape index: {}]  }
   0x1   :  { %1177 = sst [smem:[#allocation15_spill]] %s1163_s0 }
   0x2   :  { %10 = vsyncpa [#allocation3], 0 }
   0x3   :  { %11 = vsyncpa [#allocation6], 0 }
   0x4   :  { %12 = vsyncpa [#allocation4], 0 }
   0x5   :  { %14 = vsyncpa [#allocation4 + $0x1], 0  ;;  %s952_s18 = smov 0   ;;  %s954_s19 = smov 0  }
   0x6   :  { %s956_s20 = smov 0   ;;  %s958_s21 = smov 0  }
   0x7   :  { %s960_s22 = smov 0   ;;  %s962_s23 = smov 0  }
   0x8 LB: > { %1178 = sst [smem:[#allocation13_spill]] %s891_s18  ;;  %s983_s24 = sadd.s32 4294967295, %s911_s23   ;;  %s911_s23 = sphi %s962_s23, %s20_s23   ;;  %s907_s22 = sphi %s960_s22, %s1207_s22   ;;  %s903_s21 = sphi %s958_s21, %s1206_s21   ;;  %s899_s20 = sphi %s956_s20, %s1205_s20   ;;  %s895_s19 = sphi %s954_s19, %s1204_s19   ;;  %s891_s18 = sphi %s952_s18, %s1203_s18  }
   0x9   : > { %s601_s25 = sadd.s32 4294967294, %s911_s23   ;;  %p114_p0 = scmp.ne.s32.totalorder %s899_s20, %s895_s19 }
   0xa   : > { %p115_p1 = scmp.eq.s32.totalorder %s911_s23, 0  ;;  %p120_p2 = scmp.ne.s32.totalorder %s895_s19, %s891_s18 }
   0xb   : > { %p1170_p3 = scmp.eq.s32.totalorder %s983_s24, 0  ;;  %p172_p4 = scmp.eq.s32.totalorder %s983_s24, 1 }
   0xc   : > { %p994_p5 = por %p115_p1, %p114_p0  ;;  %p178_p6 = scmp.eq.s32.totalorder %s601_s25, 1 }
   0xd   : > { %p1000_p7 = por %p1170_p3, %p120_p2  ;;  %p1004_p8 = por %p172_p4, %p114_p0 }
   0xe   : > { %p1008_p9 = por %p178_p6, %p120_p2  ;;  %p602_p10 = scmp.ge.s32.totalorder %s911_s23, 1 }
   0xf   : > { %s1180_s28 = scalar_select %p1000_p7, 1, 0 }
  0x10   : > { %s1181_s29 = scalar_select %p1004_p8, 1, 0 }
  0x11   : > { %s1182_s30 = scalar_select %p1008_p9, 1, 0 }
  0x12   : > { %p185_p11 = scmp.lt.s32.totalorder %s911_s23, 3  ;;  %s913_s7 = smov [#allocation2]  }
  0x13   : > { %1183 = sst [smem:[#allocation14_spill]] %s1182_s30  ;;  %s200_s8 = sshll.u32 %s913_s7, 4  ;;  %s201_s8 = int_to_ptr.vmem [resolvable:$true] %s200_s8 }
  0x14   : > { %p1015_p13 = pnand %p602_p10, %p185_p11  ;;  %p682_p1 = scmp.lt.s32.totalorder %s911_s23, 2 }
  0x15   : > { %s914_s10 = smov [#allocation5]   ;;  %s754_s13 = scalar_lea.vmem %s201_s8, 32 }
  0x16   : > { %s1184_s6 = scalar_select %p1015_p13, 1, 0 }
  0x17   : > { %p665_p0 = pneg %p1015_p13  ;;  %p1024_p4 = pnand %p682_p1, %p994_p5 }
  0x18   : > { %s210_s11 = sshll.u32 %s914_s10, 4  ;;  %p755_p10 = scmp.ne.s32.totalorder %s201_s8, %s754_s13  ;;  %s211_s11 = int_to_ptr.vmem [resolvable:$true] %s210_s11 }
  0x19   : > { %s1185_s9 = scalar_select %p1024_p4, 1, 0 }
  0x1a   : > { %p1030_p2 = pnand %p665_p0, %p1170_p3  ;;  %p762_p1 = scmp.lt.s32.totalorder %s201_s8, %s201_s8 }
  0x1b   : > { %p763_p12 = scmp.lt.s32.totalorder %s754_s13, %s754_s13 }
  0x1c   : > { %p745_p6 = pneg %p1030_p2 }
  0x1d   : > { %p764_p9 = por %p763_p12, %p762_p1 }
  0x1e   : > { %p757_p5 = pnand %p755_p10, %p745_p6 }
  0x20   : > { %p758_p11 = pneg %p757_p5 }
  0x22   : > { %p765_p8 = pnand %p764_p9, %p758_p11 }
  0x24   : > { %768 = shalt.err (!%p765_p8)
}
  0x25   : > { %s1187_s0 = sld [smem:[#allocation15_spill]]  ;;  %s780_s16 = scalar_lea.vmem %s211_s11, 512 }
  0x26   : > { %p781_p0 = scmp.ne.s32.totalorder %s211_s11, %s780_s16  ;;  %p788_p10 = scmp.lt.s32.totalorder %s211_s11, %s211_s11 }
  0x27   : > { %p789_p5 = scmp.lt.s32.totalorder %s780_s16, %s780_s16 }
  0x28   : > { %p783_p3 = pnand %p781_p0, %p745_p6 }
  0x29   : > { %p790_p13 = por %p789_p5, %p788_p10 }
  0x2a   : > { %p784_p7 = pneg %p783_p3 }
  0x2b   : > { %668 = dma.hbm_to_vmem [thread:$0]  (!%p1030_p2), %s1187_s0, 32, %s201_s8, [#allocation3]  }
  0x2c   : > { %p791_p4 = pnand %p790_p13, %p784_p7 }
  0x2e   : > { %794 = shalt.err (!%p791_p4)
}
  0x2f   : > { %s1176_s17 = smov 128   ;;  %s916_s25 = smov 8  }
  0x30   : > { %671 = dma.hbm_to_vmem [thread:$0]  (!%p1030_p2), %s1164_s1, 512, %s211_s11, [#allocation6], %s1176_s17, %s1176_s17, %s916_s25  }
  0x31   : > { %s227_s8 = sand.u32 1, %s911_s23   ;;  %s29_s10 = sadd.s32 1, %s907_s22 }
  0x32   : > { %s229_s13 = sand.u32 1, %s899_s20   ;;  %p30_p3 = scmp.ge.s32.totalorder %s29_s10, 2 }
  0x33   : > { %s606_s14 = sshll.u32 %s229_s13, 5  ;;  %s607_s15 = sshll.u32 %s907_s22, 7 }
  0x34   : > { %s1209_s10 = smov (%p30_p3, %s29_s10), 0  ;;  %s236_s12 = scalar_lea.hbm %s1166_s3, %s607_s15 }
  0x35   : > { %s231_s0 = scalar_lea.vmem [#allocation7], %s606_s14  ;;  %s104_s18 = ssub.s32 %s907_s22, %s1209_s10 }
  0x36   : > { %s237_s30 = sshll.u32 %s231_s0, 4  ;;  %p1066_p7 = scmp.eq.s32.totalorder %s104_s18, 0  ;;  %s238_s30 = int_to_ptr.vmem [resolvable:$true] %s237_s30 }
  0x37   : > { %s228_s11 = scalar_lea.sflag [#allocation3], %s227_s8  ;;  %p1189_p8 = scmp.ne.s32.totalorder %s1185_s9, 0 }
  0x38   : > { %s808_s7 = scalar_lea.vmem %s238_s30, 512  ;;  %s917_s13 = smov [#allocation7]  }
  0x39   : > { %p797_p9 = pneg %p1189_p8  ;;  %p809_p12 = scmp.ne.s32.totalorder %s238_s30, %s808_s7 }
  0x3a   : > { %s813_s17 = sshll.u32 %s917_s13, 4  ;;  %s814_s17 = int_to_ptr.vmem [resolvable:$false] %s813_s17 }
  0x3b   : > { %p811_p13 = pnand %p809_p12, %p797_p9  ;;  %s815_s26 = scalar_lea.vmem %s814_s17, 1024 }
  0x3c   : > { %p816_p2 = scmp.lt.s32.totalorder %s238_s30, %s814_s17  ;;  %p817_p6 = scmp.lt.s32.totalorder %s815_s26, %s808_s7 }
  0x3d   : > { %p812_p4 = pneg %p811_p13 }
  0x3e   : > { %p818_p11 = por %p817_p6, %p816_p2 }
  0x40   : > { %p819_p1 = pnand %p818_p11, %p812_p4 }
  0x42   : > { %822 = shalt.err (!%p819_p1)
}
  0x43   : > { %s918_s0 = smov 256   ;;  %s1190_s18 = smov 128  }
  0x44   : > { %675 = dma.hbm_to_vmem [thread:$0]  (!%p1189_p8), %s236_s12, 512, %s238_s30, %s228_s11, %s918_s0, %s1190_s18, %s916_s25  }
  0x45   : > { %s1191_s8 = sadd.s32 1, %s899_s20  ;;  %p1192_p0 = scmp.ne.s32.totalorder %s1184_s6, 0 }
  0x46   : > { %s1081_s14 = scalar_select %p1066_p7, %s899_s20, %s1191_s8  }
  0x47   : > { %255 = sbr.rel (%p1192_p0) target bundleno = 513 (0x201), region = 40  ;;  %p1193_p10 = scmp.eq.s32.totalorder (!%p1192_p0), %s983_s24, 0 }
  0x4c   : > { %874 = dma.done.wait (%p1193_p10), [#allocation3], 32   ;;  %p1194_p5 = pmov %p1193_p10 }
  0x4e   : > { %876 = vsyncadd (%p1194_p5), [#allocation3], 4294967264  ;;  %p1195_p3 = pmov %p1194_p5 }
  0x50   : > { %878 = dma.done.wait (%p1195_p3), [#allocation6], 512   ;;  %p1196_p9 = pmov %p1195_p3 }
  0x51   : > { %s265_s30 = sand.u32 1, %s983_s24   ;;  %s1095_s9 = sand.u32 1, %s895_s19  }
  0x52   : > { %880 = vsyncadd (%p1196_p9), [#allocation6], 4294966784  ;;  %s611_s6 = sshll.u32 %s1095_s9, 5  ;;  %s266_s17 = scalar_lea.sflag [#allocation3], %s265_s30 }
  0x53   : > { %s1098_s25 = scalar_lea.vmem [#allocation7], %s611_s6  ;;  %p1197_p7 = scmp.ne.s32.totalorder %s1180_s28, 0 }
  0x55   : > { %882 = dma.done.wait (%p1197_p7), %s266_s17, 512  }
  0x56   : > { %884 = vsyncadd (%p1197_p7), %s266_s17, 4294966784  ;;  %v919_v0 = vmov 0.0   ;;  %vm920_vm0 = vmmov 0   ;;  %v306_v1 = vld [vmem:[#allocation5 + $0x18] sm:$0xff]  ;;  %v305_v2 = vld [vmem:[#allocation5 + $0x10] sm:$0xff]  ;;  %vm314_vm1 = vcmask 261120  }
  0x57   : > { %631 = vmatprep.subr.mxu0 %v919_v0  ;;  %639 = vmatprep.mubr.msk.f32.mxu0 %vm920_vm0, %v919_v0  ;;  %v391_v3 = vld [vmem:[%s1098_s25 + $0x18] sm:$0xff]  ;;  %v304_v4 = vld [vmem:[#allocation5 + $0x8] sm:$0xff]  ;;  %v390_v5 = vld [vmem:[%s1098_s25 + $0x10] sm:$0xff]  ;;  %p299_p8 = scmp.lt.s32.totalorder %s903_s21, 1  ;;  %s612_s11 = sshll.u32 %s1095_s9, 1 }
  0x58   : > { %642 = vmatprep.subr.mxu1 %v919_v0  ;;  %650 = vmatprep.mubr.msk.f32.mxu1 %vm920_vm0, %v919_v0  ;;  %v303_v6 = vld [vmem:[#allocation5] sm:$0xff]  ;;  %v302_v7 = vld [vmem:[#allocation2] sm:$0x3]  ;;  %v389_v8 = vld [vmem:[%s1098_s25 + $0x8] sm:$0xff]  ;;  %s618_s7 = sshll.u32 %s903_s21, 5  ;;  %s298_s13 = scalar_lea.vmem [#allocation8], %s612_s11 }
  0x59   : > { %632 = vmatpush3.msra.mxu0 %v306_v1  ;;  %643 = vmatpush3.msra.mxu1 %v391_v3  ;;  %v388_v9 = vld [vmem:[%s1098_s25] sm:$0xff]  ;;  %v613_v10 = vld [vmem:[%s1165_s2] ss:$0 sm:$0xff]  ;;  %s300_s15 = scalar_select %p299_p8, %s903_s21, 1 }
  0x5a   : > { %633 = vmatprep.subr.mxu0 %v919_v0  ;;  %644 = vmatprep.subr.mxu1 %v919_v0  ;;  %s490_s26 = sshll.u32 %s298_s13, 4  ;;  %s1121_s8 = scalar_lea.hbm %s1168_s5, %s618_s7  ;;  %s491_s26 = int_to_ptr.vmem [resolvable:$true] %s490_s26 }
  0x5b   : > { %634 = vmatpush3.msra.mxu0 %v305_v2  ;;  %645 = vmatpush3.msra.mxu1 %v390_v5  ;;  %s301_s27 = scalar_lea.vmem %s1167_s4, %s300_s15  ;;  %s475_s30 = scalar_lea.sflag [#allocation4], %s1095_s9 }
  0x5c   : > { %635 = vmatprep.subr.mxu0 %v919_v0  ;;  %646 = vmatprep.subr.mxu1 %v919_v0  ;;  %v615_v14 = vld [vmem:[%s301_s27] ss:$0 sm:$0xff]  ;;  %s823_s6 = scalar_lea.vmem %s491_s26, 32  ;;  %p1198_p13 = scmp.ne.s32.totalorder %s1181_s29, 0 }
  0x5d   : > { %636 = vmatpush3.msra.mxu0 %v304_v4  ;;  %647 = vmatpush3.msra.mxu1 %v389_v8  ;;  %p824_p12 = scmp.ne.s32.totalorder %s491_s26, %s823_s6  ;;  %s921_s17 = smov [#allocation8]  }
  0x5e   : > { %637 = vmatprep.subr.mxu0 %v919_v0  ;;  %648 = vmatprep.subr.mxu1 %v919_v0  ;;  %s827_s25 = sshll.u32 %s921_s17, 4  ;;  %s828_s25 = int_to_ptr.vmem [resolvable:$false] %s827_s25 }
  0x5f   : > { %638 = vmatpush3.msra.mxu0 %v303_v6  ;;  %649 = vmatpush3.msra.mxu1 %v388_v9  ;;  %p825_p4 = pnand %p824_p12, %p1198_p13  ;;  %s829_s21 = scalar_lea.vmem %s828_s25, 64 }
  0x60   : > { %640 = vmatmul.mubr.msk.f32.vlgmr.msra.gmra.mxu0 %vm314_vm1, %v302_v7  ;;  %p830_p6 = scmp.lt.s32.totalorder %s491_s26, %s828_s25  ;;  %p831_p11 = scmp.lt.s32.totalorder %s829_s21, %s823_s6 }
  0x61   : > { %p826_p2 = pneg %p825_p4 }
  0x62   : > { %p832_p1 = por %p831_p11, %p830_p6 }
  0x64   : > { %p833_p0 = pnand %p832_p1, %p826_p2 }
 0x120   : > { %v384_v11 = vpop.f32.mrf.mxu0 }
 0x121   : > { %v385_v12 = vadd.f32 %v613_v10, %v384_v11 }
 0x122   : > { %v641_v13 = vpop.f32.mrf.mxu0 }
 0x123   : > { %651 = vmatmul.mubr.msk.f32.vlgmr.msra.gmra.mxu1 %vm314_vm1, %v385_v12 }
 0x1e3   : > { %v468_v15 = vpop.f32.mrf.mxu1 }
 0x1e4   : > { %v469_v16 = vadd.f32 %v615_v14, %v468_v15 }
 0x1e5   : > { %v652_v17 = vpop.f32.mrf.mxu1 }
 0x1e6   : > { %741 = vtanh.f32 %v469_v16 }
 0x1f3   : > { %v742_v18 = vpop.eup %741 }
 0x1f4   : > { %473 = vst [vmem:[%s298_s13] sm:$0x3] %v742_v18 }
 0x1f5   : > { %836 = shalt.err (!%p833_p0)
}
 0x1f6   : > { %s837_s24 = scalar_lea.hbm %s1121_s8, 32  ;;  %s841_s15 = scalar_lea.hbm %s1168_s5, 64 }
 0x1f7   : > { %p838_p10 = scmp.ne.s32.totalorder %s1121_s8, %s837_s24  ;;  %p842_p9 = scmp.lt.s32.totalorder %s1121_s8, %s1168_s5 }
 0x1f8   : > { %p843_p7 = scmp.lt.s32.totalorder %s841_s15, %s837_s24 }
 0x1f9   : > { %p839_p5 = pnand %p838_p10, %p1198_p13 }
 0x1fa   : > { %p844_p8 = por %p843_p7, %p842_p9 }
 0x1fb   : > { %p840_p3 = pneg %p839_p5 }
 0x1fd   : > { %p845_p12 = pnand %p844_p8, %p840_p3 }
 0x1ff   : > { %848 = shalt.err (!%p845_p12)
}
 0x200   : > { %663 = dma.vmem_to_hbm [thread:$0]  (%p1198_p13), %s491_s26, 32, %s1121_s8, %s475_s30  }
 0x201 PF: > { %s1199_s27 = sld [smem:[#allocation13_spill]]  ;;  %p1202_p2 = scmp.ge.s32.totalorder %s911_s23, 2 }
 0x202   : > { %s1200_s11 = sld [smem:[#allocation14_spill]] }
 0x207   : > { %s502_s7 = sand.u32 1, %s1199_s27  }
 0x208   : > { %p1201_p4 = scmp.ne.s32.totalorder %s1200_s11, 0  ;;  %s503_s13 = scalar_lea.sflag [#allocation4], %s502_s7 }
 0x20a   : > { %p677_p6 = pnand %p1202_p2, %p1201_p4 }
 0x20c   : > { %p678_p11 = pneg %p677_p6 }
 0x20e   : > { %886 = dma.done.wait (%p678_p11), %s503_s13, 32  }
 0x20f   : > { %888 = vsyncadd (%p678_p11), %s503_s13, 4294967264  ;;  %s20_s23 = sadd.s32 1, %s911_s23   ;;  %s1203_s18 = smov %s895_s19 }
 0x210   : > { %p17_p1 = scmp.ge.s32.totalorder %s20_s23, 4   ;;  %s1204_s19 = smov %s899_s20 }
 0x211   : > { %s1205_s20 = smov %s1081_s14  ;;  %s1206_s21 = smov %s907_s22 }
 0x212   : > { %s1207_s22 = smov %s1209_s10  ;;  %19 = sbr.rel (!%p17_p1) target bundleno = 8 (0x8), region = 96 }
 0x217   :  { %508 = vsyncpa [#allocation3], 1 }
 0x218   :  { %510 = vsyncpa [#allocation3 + $0x1], 1 }
 0x219   :  { %511 = vsyncpa [#allocation6], 1 }
 0x21a   :  { %512 = vsyncpa [#allocation4], 1 }
 0x21b   :  { %514 = vsyncpa [#allocation4 + $0x1], 1 }

</bundles_post_ra>
